<compile_context>
chip_gen: v7x
topology: tpu7x:2x2x1
jax: 0.10.0
libtpu: 0.0.40
codegen_flags: <defaults>
</compile_context>

<pallas_src>
import functools

import jax
import jax.numpy as jnp
from jax.experimental import pallas as pl
from jax.experimental.pallas import tpu as pltpu


def _round_up(x, m):
    return ((x + m - 1) // m) * m


# ----------------------------------------------------------------------------
# Pallas kernels
# ----------------------------------------------------------------------------
def _ctc_kernel(x_ref, w_ref, b_ref, o_ref, *, apply_softmax):
    """One M-row tile of the CTC head.

    x_ref: (TM, C) bf16   w_ref: (C, Kp) bf16   b_ref: (1, Kp) f32
    o_ref: (TM, Kp) f32 -- softmax over classes (eval) or raw logits (train).
    """
    logits = jnp.dot(x_ref[...], w_ref[...],
                     preferred_element_type=jnp.float32) + b_ref[...]
    if apply_softmax:
        m = jnp.max(logits, axis=-1, keepdims=True)
        p = jnp.exp(logits - m)                # padded lanes: exp(-1e30) == 0
        s = jnp.sum(p, axis=-1, keepdims=True)
        out = p * pl.reciprocal(s, approx=True)
    else:
        out = logits
    o_ref[...] = out.astype(o_ref.dtype)


def _fused_heads_kernel(x_ref, w_ref, b_ref, pos_ref, ctc_ref, nrtr_ref, *,
                        kp, apply_softmax):
    """One M-row tile of the fused CTC + NRTR pre-GTC heads.

    A single (TM, C) x (C, Kp+Dp) MXU pass covers both heads; the result
    columns are split on-chip at the 128-aligned boundary `kp`.

    x_ref  : (TM, C)      bf16
    w_ref  : (C, Kp+Dp)   bf16   (concat of padded CTC and NRTR weights)
    b_ref  : (1, Kp)      f32
    pos_ref: (TM, Dp)     f32    (positional embedding expanded to rows)
    """
    y = jnp.dot(x_ref[...], w_ref[...], preferred_element_type=jnp.float32)

    # CTC columns [0, kp): Linear bias + (eval-only) softmax.
    logits = y[:, :kp] + b_ref[...]
    if apply_softmax:
        m = jnp.max(logits, axis=-1, keepdims=True)
        p = jnp.exp(logits - m)
        s = jnp.sum(p, axis=-1, keepdims=True)
        ctc = p * pl.reciprocal(s, approx=True)
    else:
        ctc = logits
    ctc_ref[...] = ctc.astype(ctc_ref.dtype)

    # NRTR columns [kp, kp+Dp): FCTranspose (no bias) + AddPos.
    nrtr_ref[...] = (y[:, kp:] + pos_ref[...]).astype(nrtr_ref.dtype)


# ----------------------------------------------------------------------------
# Wrappers (pallas_call plumbing)
# ----------------------------------------------------------------------------
def ctc_head_pallas(x_mc, w_pad, b_pad, *, tm, apply_softmax):
    """x_mc: (M, C) bf16 (M a multiple of tm), w_pad: (C, Kp) bf16,
    b_pad: (1, Kp) f32  ->  (M, Kp) f32."""
    M, C = x_mc.shape
    Kp = w_pad.shape[1]
    kernel = functools.partial(_ctc_kernel, apply_softmax=apply_softmax)
    return pl.pallas_call(
        kernel,
        out_shape=jax.ShapeDtypeStruct((M, Kp), jnp.float32),
        grid=(M // tm,),
        in_specs=[
            pl.BlockSpec((tm, C), lambda i: (i, 0)),
            pl.BlockSpec((C, Kp), lambda i: (0, 0)),
            pl.BlockSpec((1, Kp), lambda i: (0, 0)),
        ],
        out_specs=pl.BlockSpec((tm, Kp), lambda i: (i, 0)),
        compiler_params=pltpu.CompilerParams(
            dimension_semantics=("parallel",)),
    )(x_mc, w_pad, b_pad)


def fused_heads_pallas(x_mc, w_cat, b_pad, pos_rows, *, tm, kp, apply_softmax):
    """Single launch producing (CTC output, NRTR pre-GTC features), both
    lane-dense (last dim a multiple of 128)."""
    M, C = x_mc.shape
    Ncat = w_cat.shape[1]
    Dp = Ncat - kp
    kernel = functools.partial(_fused_heads_kernel, kp=kp,
                               apply_softmax=apply_softmax)
    return pl.pallas_call(
        kernel,
        out_shape=(jax.ShapeDtypeStruct((M, kp), jnp.float32),
                   jax.ShapeDtypeStruct((M, Dp), jnp.float32)),
        grid=(M // tm,),
        in_specs=[
            pl.BlockSpec((tm, C), lambda i: (i, 0)),
            pl.BlockSpec((C, Ncat), lambda i: (0, 0)),
            pl.BlockSpec((1, kp), lambda i: (0, 0)),
            pl.BlockSpec((tm, Dp), lambda i: (i, 0)),
        ],
        out_specs=(pl.BlockSpec((tm, kp), lambda i: (i, 0)),
                   pl.BlockSpec((tm, Dp), lambda i: (i, 0))),
        compiler_params=pltpu.CompilerParams(
            dimension_semantics=("parallel",)),
    )(x_mc, w_cat, b_pad, pos_rows)


# ----------------------------------------------------------------------------
# MultiHead forward (glue in plain JAX, hot path in Pallas)
# ----------------------------------------------------------------------------
@functools.partial(jax.jit, static_argnames=("training",))
def multi_head_forward(x_nchw, params, training=False):
    """Reproduces MultiHead.forward.

    x_nchw: (B, C, 1, W) NCHW feature map (H must be 1, as in PP-OCR rec).
    Inference (training=False) returns the CTC softmax output only, matching
    the PyTorch module.  training=True returns the dict with the defined
    parts (CTC raw logits, ctc_neck, nrtr_before_gtc).
    """
    B, C, H, W = x_nchw.shape
    assert H == 1, "Im2Seq / rec head requires H == 1"

    # Flatten(start_dim=2) + permute(0, 2, 1): (B, C, 1, W) -> (B, W, C).
    # This layout IS the Im2Seq / ctc_neck output, so the transpose is shared
    # between the kernel input and the training output.
    x_seq = jnp.transpose(x_nchw.reshape(B, C, W), (0, 2, 1))   # (B, W, C)

    # Merge B and W into one M row axis, tiled as a parallel grid dimension.
    M = B * W
    TM = min(512, _round_up(M, 8))
    M_pad = _round_up(M, TM)
    x_mc = x_seq.reshape(M, C).astype(jnp.bfloat16)
    if M_pad != M:
        x_mc = jnp.pad(x_mc, ((0, M_pad - M), (0, 0)))

    # CTC classes padded up to a lane-dense multiple of 128; padded bias is
    # -1e30 (f32 end-to-end) so padded logits contribute exactly 0 to the
    # eval softmax denominator.
    K = params["ctc_w"].shape[1]
    Kp = _round_up(K, 128)
    w_ctc = jnp.pad(params["ctc_w"],
                    ((0, 0), (0, Kp - K))).astype(jnp.bfloat16)
    b_pad = jnp.concatenate(
        [params["ctc_b"].astype(jnp.float32),
         jnp.full((Kp - K,), -1e30, jnp.float32)]).reshape(1, Kp)

    if not training:
        ctc_pad = ctc_head_pallas(x_mc, w_ctc, b_pad, tm=TM,
                                  apply_softmax=True)
        return ctc_pad[:M, :K].reshape(B, W, K)

    # --- training: one fused launch, one MXU pass covers both heads ---------
    D = params["nrtr_fc_w"].shape[1]
    Dp = _round_up(D, 128)
    w_nrtr = jnp.pad(params["nrtr_fc_w"],
                     ((0, 0), (0, Dp - D))).astype(jnp.bfloat16)
    w_cat = jnp.concatenate([w_ctc, w_nrtr], axis=1)          # (C, Kp+Dp)

    pos_full = params["dec_pos_embed"]                         # (1, max_len, D)
    if W > pos_full.shape[1]:
        raise ValueError(
            f"Input sequence length {W} > positional embedding max length "
            f"{pos_full.shape[1]}")
    pos = jnp.pad(pos_full[0, :W, :].astype(jnp.float32),
                  ((0, 0), (0, Dp - D)))                       # (W, Dp)
    pos_rows = jnp.tile(pos, (B, 1))                           # (M, Dp)
    if M_pad != M:
        pos_rows = jnp.pad(pos_rows, ((0, M_pad - M), (0, 0)))

    # CTCHead returns raw logits during training (softmax only in eval).
    ctc_pad, nrtr_pad = fused_heads_pallas(
        x_mc, w_cat, b_pad, pos_rows, tm=TM, kp=Kp, apply_softmax=False)

    head_out = {
        "ctc": ctc_pad[:M, :K].reshape(B, W, K),        # raw logits (training)
        "ctc_neck": x_seq,                               # Im2Seq output
        "nrtr_before_gtc": nrtr_pad[:M, :D].reshape(B, W, D),
    }
    # TODO(synk): NRTRTransformer (nrtr_gtc_head) / SARHead sources are not
    # provided; the 'gtc' / 'nrtr' / 'sar' dict entries are not produced.
    return head_out


# ----------------------------------------------------------------------------
# Deterministic parameter construction
# ----------------------------------------------------------------------------
def make_params(key, in_channels, ctc_classes, nrtr_dim, pos_max_len):
    k1, k2, k3, k4 = jax.random.split(key, 4)
    # CTCHead: nn.Linear(in_channels, ctc_classes)
    ctc_w = jax.random.normal(k1, (in_channels, ctc_classes), jnp.float32) * 0.05
    ctc_b = jax.random.normal(k2, (ctc_classes,), jnp.float32) * 0.05
    # FCTranspose: nn.Linear(in_channels, nrtr_dim, bias=False)
    nrtr_fc_w = jax.random.normal(k3, (in_channels, nrtr_dim), jnp.float32) * 0.05
    # AddPos: trunc_normal_(zeros(1, pos_max_len, nrtr_dim), std=1, a=-2, b=2)
    dec_pos_embed = jax.random.truncated_normal(
        k4, -2.0, 2.0, (1, pos_max_len, nrtr_dim), jnp.float32)
    return dict(ctc_w=ctc_w, ctc_b=ctc_b,
                nrtr_fc_w=nrtr_fc_w, dec_pos_embed=dec_pos_embed)


# ----------------------------------------------------------------------------
if __name__ == "__main__":
    key = jax.random.PRNGKey(0)
    kx, kp = jax.random.split(key)

    B, C, H, W = 2, 64, 1, 16       # NCHW input to MultiHead
    CTC_CLASSES = 96                # out_channels_list['CTCLabelDecode']
    NRTR_DIM = 64                   # head config 'nrtr_dim'
    POS_MAX_LEN = 80                # 'max_seq_len_for_pos_emb'

    x = jax.random.normal(kx, (B, C, H, W), jnp.float32)
    params = make_params(kp, C, CTC_CLASSES, NRTR_DIM, POS_MAX_LEN)

    # Inference path (returns CTC softmax output, like the PyTorch module).
    ctc_out = jax.block_until_ready(
        multi_head_forward(x, params, training=False))

    # Training-mode partial dict (exercises the fused CTC + NRTR kernel).
    train_out = jax.block_until_ready(
        multi_head_forward(x, params, training=True))

    # Plain-JAX float32 reference.  Tolerances are loosened vs f32 because the
    # kernels feed the MXU bf16 inputs (accumulation / softmax stay f32).
    x_seq = jnp.transpose(x.reshape(B, C, W), (0, 2, 1))
    ref_logits = x_seq @ params["ctc_w"] + params["ctc_b"]
    ref_ctc_eval = jax.nn.softmax(ref_logits, axis=-1)
    ref_nrtr = x_seq @ params["nrtr_fc_w"] + params["dec_pos_embed"][:, :W, :]

    assert ctc_out.shape == (B, W, CTC_CLASSES)
    assert jnp.allclose(ctc_out, ref_ctc_eval, atol=2e-2, rtol=2e-2)
    # Training-mode CTC output is raw logits (PP-OCR CTCHead semantics).
    assert jnp.allclose(train_out["ctc"], ref_logits, atol=2e-2, rtol=2e-2)
    assert jnp.allclose(train_out["nrtr_before_gtc"], ref_nrtr,
                        atol=3e-2, rtol=3e-2)
    assert jnp.allclose(train_out["ctc_neck"], x_seq)

    print("KERNEL_OK")
</pallas_src>

<mosaic_0001>
module attributes {stable_mosaic.version = 11 : i64} {
  func.func @_ctc_kernel(%arg0: i32, %arg1: memref<32x64xbf16, #tpu.memory_space<vmem>>, %arg2: memref<64x128xbf16, #tpu.memory_space<vmem>>, %arg3: memref<1x128xf32, #tpu.memory_space<vmem>>, %arg4: memref<32x128xf32, #tpu.memory_space<vmem>>) attributes {dimension_semantics = [#tpu.dimension_semantics<parallel>], iteration_bounds = array<i64: 1>, scalar_prefetch = 0 : i64, scratch_operands = 0 : i64, tpu.core_type = #tpu.core_type<tc>, window_params = [{transform_indices = @transform_0, window_bounds = array<i64: 32, 64>}, {pipeline_mode = #tpu.pipeline_mode<synchronous>, transform_indices = @transform_1, window_bounds = array<i64: 64, 128>}, {pipeline_mode = #tpu.pipeline_mode<synchronous>, transform_indices = @transform_2, window_bounds = array<i64: 1, 128>}, {transform_indices = @transform_3, window_bounds = array<i64: 32, 128>}]} {
    %c0 = arith.constant 0 : index
    %c0_0 = arith.constant 0 : index
    %0 = vector.load %arg1[%c0, %c0_0] : memref<32x64xbf16, #tpu.memory_space<vmem>>, vector<32x64xbf16>
    %c0_1 = arith.constant 0 : index
    %c0_2 = arith.constant 0 : index
    %1 = vector.load %arg2[%c0_1, %c0_2] : memref<64x128xbf16, #tpu.memory_space<vmem>>, vector<64x128xbf16>
    %cst = arith.constant dense<0.000000e+00> : vector<32x128xf32>
    %2 = tpu.matmul %0, %1, %cst {dimension_numbers = #tpu.dot_dimension_numbers<[1], [0], [0], [1], [0, 0, 1, 1], [], []>} : vector<32x64xbf16>, vector<64x128xbf16>, vector<32x128xf32> -> vector<32x128xf32>
    %c0_3 = arith.constant 0 : index
    %c0_4 = arith.constant 0 : index
    %3 = vector.load %arg3[%c0_3, %c0_4] : memref<1x128xf32, #tpu.memory_space<vmem>>, vector<1x128xf32>
    %4 = vector.broadcast %3 : vector<1x128xf32> to vector<32x128xf32>
    %5 = arith.addf %2, %4 : vector<32x128xf32>
    %cst_5 = arith.constant dense<0xFF800000> : vector<32xf32>
    %6 = vector.multi_reduction <maximumf>, %5, %cst_5 [1] : vector<32x128xf32> to vector<32xf32>
    %7 = vector.shape_cast %6 : vector<32xf32> to vector<32x1xf32>
    %8 = vector.broadcast %7 : vector<32x1xf32> to vector<32x128xf32>
    %9 = arith.subf %5, %8 : vector<32x128xf32>
    %10 = math.exp %9 : vector<32x128xf32>
    %cst_6 = arith.constant dense<0.000000e+00> : vector<32xf32>
    %11 = vector.multi_reduction <add>, %10, %cst_6 [1] : vector<32x128xf32> to vector<32xf32>
    %12 = vector.shape_cast %11 : vector<32xf32> to vector<32x1xf32>
    %13 = tpu.reciprocal %12 {approx = true} : vector<32x1xf32> -> vector<32x1xf32>
    %14 = vector.broadcast %13 : vector<32x1xf32> to vector<32x128xf32>
    %15 = arith.mulf %10, %14 : vector<32x128xf32>
    %c0_7 = arith.constant 0 : index
    %c0_8 = arith.constant 0 : index
    %16 = vector.load %arg4[%c0_7, %c0_8] : memref<32x128xf32, #tpu.memory_space<vmem>>, vector<32x128xf32>
    tpu.vector_store %arg4[%c0_7, %c0_8], %15 {strides = array<i32>} : memref<32x128xf32, #tpu.memory_space<vmem>>, vector<32x128xf32>,
    return
  }
  func.func @transform_0(%arg0: i32) -> (i32, i32) {
    %c0_i32 = arith.constant 0 : i32
    %c0_i32_0 = arith.constant 0 : i32
    return %arg0, %c0_i32 : i32, i32
  }
  func.func @transform_1(%arg0: i32) -> (i32, i32) {
    %c0_i32 = arith.constant 0 : i32
    %c0_i32_0 = arith.constant 0 : i32
    %c0_i32_1 = arith.constant 0 : i32
    return %c0_i32, %c0_i32_0 : i32, i32
  }
  func.func @transform_2(%arg0: i32) -> (i32, i32) {
    %c0_i32 = arith.constant 0 : i32
    %c0_i32_0 = arith.constant 0 : i32
    %c0_i32_1 = arith.constant 0 : i32
    return %c0_i32, %c0_i32_0 : i32, i32
  }
  func.func @transform_3(%arg0: i32) -> (i32, i32) {
    %c0_i32 = arith.constant 0 : i32
    %c0_i32_0 = arith.constant 0 : i32
    return %arg0, %c0_i32 : i32, i32
  }
}

</mosaic_0001>

<bundles_post_ra>
// kernel: multi_head_forward.1
= control target key start
LH: loop header
LB: loop body
LE: loop exit
PB: predicated region body
PF: predicated region fallthrough
CT: control target
= control target key end

     0   :  { %vm69_vm0 = vcmask 523264   ;;  %s313_s0 = inlined_call_operand.vmem [shape: bf16[32,64], index: 0, kind: input, shape index: {}]   ;;  %s314_s1 = inlined_call_operand.vmem [shape: bf16[64,128], index: 1, kind: input, shape index: {}]   ;;  %s315_s2 = inlined_call_operand.vmem [shape: f32[1,128], index: 2, kind: input, shape index: {}]   ;;  %s316_s3 = inlined_call_operand.hbm [shape: f32[32,128], index: 3, kind: output, shape index: {}]  }
   0x1   :  { %v211_v0 = vld [vmem:[%s314_s1] sm:$0xff]   ;;  %v212_v1 = vld [vmem:[%s314_s1 + $0x8] sm:$0xff]   ;;  %v213_v2 = vld [vmem:[%s314_s1 + $0x10] sm:$0xff]  }
   0x2   :  { %196 = vmatprep.subr.bf16.mxu0 %v211_v0  ;;  %v215_v3 = vld [vmem:[%s313_s0] sm:$0xff]  }
   0x3   :  { %197 = vmatpush3.bf16.msra.mxu0 %v211_v0  ;;  %204 = vmatprep.mubr.msk.bf16.mxu0 %vm69_vm0, %v215_v3 }
   0x4   :  { %198 = vmatprep.subr.bf16.mxu0 %v212_v1 }
   0x5   :  { %8 = vsyncpa [#allocation3], 0  ;;  %v214_v4 = vld [vmem:[%s314_s1 + $0x18] sm:$0xff]   ;;  %v216_v5 = vld [vmem:[%s313_s0 + $0x8] sm:$0xff]   ;;  %s257_s0 = smov [#allocation2]  }
   0x6   :  { %v181_v6 = vld [vmem:[%s315_s2] ss:$0 sm:$0xff]  ;;  %s170_s1 = sshll.u32 %s257_s0, 4  ;;  %s171_s1 = int_to_ptr.vmem [resolvable:$true] %s170_s1 }
   0x7   :  { %199 = vmatpush3.bf16.msra.mxu0 %v212_v1  ;;  %s233_s2 = scalar_lea.vmem %s171_s1, 512  ;;  %p238_p1 = scmp.lt.s32.totalorder %s171_s1, %s171_s1 }
   0x8   :  { %200 = vmatprep.subr.bf16.mxu0 %v213_v2  ;;  %p234_p0 = scmp.ne.s32.totalorder %s171_s1, %s233_s2  ;;  %p239_p2 = scmp.lt.s32.totalorder %s233_s2, %s233_s2 }
   0xa   :  { %p240_p3 = por %p239_p2, %p238_p1 }
   0xb   :  { %201 = vmatpush3.bf16.msra.mxu0 %v213_v2 }
   0xc   :  { %202 = vmatprep.subr.bf16.mxu0 %v214_v4  ;;  %p241_p4 = pnand %p240_p3, %p234_p0 }
   0xf   :  { %203 = vmatpush3.bf16.msra.mxu0 %v214_v4 }
  0x12   :  { %205 = vmatmul.mubr.msk.bf16.vlgmr.msra.gmra.mrb[0].mxu0 %vm69_vm0, %v216_v5 }
  0xe5   :  { %v206_v7 = vpop.f32.mrb[0].mxu0 }
  0xe6   :  { %v119_v8 = vadd.f32 %v206_v7, %v181_v6  ;;  %v110_v9 = vpop.f32.mrb[1].mxu0 }
  0xe7   :  { %v111_v10 = vadd.f32 %v181_v6, %v110_v9  ;;  %v207_v11 = vpop.f32.mrb[2].mxu0 }
  0xe8   :  { %129 = vmax.xlane.f32.xlu1 %v119_v8  ;;  %v113_v12 = vpop.f32.mrb[3].mxu0  ;;  %v122_v13 = vadd.f32 %v207_v11, %v181_v6 }
  0xe9   :  { %125 = vmax.xlane.f32.xlu0 %v111_v10  ;;  %v114_v14 = vadd.f32 %v181_v6, %v113_v12 }
  0xec   :  { %131 = vmax.xlane.f32.xlu1 %v122_v13 }
  0xed   :  { %127 = vmax.xlane.f32.xlu0 %v114_v14 }
 0x175   :  { %v130_v15 = vpop.xlane.xlu1 %129 }
 0x176   :  { %v135_v16 = vsub.f32 %v119_v8, %v130_v15  ;;  %v126_v17 = vpop.xlane.xlu0 %125 }
 0x177   :  { %v133_v18 = vsub.f32 %v111_v10, %v126_v17 }
 0x178   :  { %v141_v21 = vmul.f32 1.442695, %v135_v16 }
 0x179   :  { %v137_v19 = vmul.f32 1.442695, %v133_v18  ;;  %v132_v20 = vpop.xlane.xlu1 %131 }
 0x17a   :  { %v128_v22 = vpop.xlane.xlu0 %127  ;;  %v136_v23 = vsub.f32 %v122_v13, %v132_v20 }
 0x17b   :  { %217 = vpow2.f32 %v137_v19  ;;  %v134_v24 = vsub.f32 %v114_v14, %v128_v22 }
 0x17c   :  { %219 = vpow2.f32 %v141_v21  ;;  %v143_v26 = vmul.f32 1.442695, %v136_v23 }
 0x17d   :  { %v139_v25 = vmul.f32 1.442695, %v134_v24 }
 0x17f   :  { %221 = vpow2.f32 %v139_v25 }
 0x180   :  { %223 = vpow2.f32 %v143_v26 }
 0x185   :  { %v218_v27 = vpop.eup %217 }
 0x186   :  { %145 = vadd.xlane.f32.xlu0 %v218_v27  ;;  %v220_v28 = vpop.eup %219 }
 0x189   :  { %v222_v29 = vpop.eup %221 }
 0x18a   :  { %149 = vadd.xlane.f32.xlu0 %v220_v28  ;;  %147 = vadd.xlane.f32.xlu1 %v222_v29  ;;  %v224_v30 = vpop.eup %223 }
 0x18e   :  { %151 = vadd.xlane.f32.xlu1 %v224_v30 }
 0x213   :  { %v146_v31 = vpop.xlane.xlu0 %145 }
 0x214   :  { %225 = vrcp.f32 %v146_v31 }
 0x217   :  { %v148_v32 = vpop.xlane.xlu1 %147  ;;  %v150_v33 = vpop.xlane.xlu0 %149 }
 0x218   :  { %227 = vrcp.f32 %v148_v32 }
 0x219   :  { %229 = vrcp.f32 %v150_v33 }
 0x21b   :  { %v152_v34 = vpop.xlane.xlu1 %151 }
 0x21c   :  { %231 = vrcp.f32 %v152_v34 }
 0x21e   :  { %v226_v35 = vpop.eup %225 }
 0x21f   :  { %v157_v36 = vmul.f32 %v226_v35, %v218_v27 }
 0x221   :  { %161 = vst [vmem:[#allocation2] sm:$0xff] %v157_v36 }
 0x222   :  { %v228_v37 = vpop.eup %227 }
 0x223   :  { %v230_v38 = vpop.eup %229  ;;  %v158_v39 = vmul.f32 %v228_v37, %v222_v29 }
 0x224   :  { %v159_v40 = vmul.f32 %v230_v38, %v220_v28 }
 0x225   :  { %162 = vst [vmem:[#allocation2 + $0x8] sm:$0xff] %v158_v39 }
 0x226   :  { %v232_v41 = vpop.eup %231  ;;  %163 = vst [vmem:[#allocation2 + $0x10] sm:$0xff] %v159_v40 }
 0x227   :  { %v160_v42 = vmul.f32 %v232_v41, %v224_v30 }
 0x229   :  { %164 = vst [vmem:[#allocation2 + $0x18] sm:$0xff] %v160_v42 }
 0x22a   :  { %244 = shalt.err (!%p241_p4)
}
 0x22b   :  { %s245_s28 = scalar_lea.hbm %s316_s3, 512 }
 0x22c   :  { %p246_p5 = scmp.ne.s32.totalorder %s316_s3, %s245_s28  ;;  %p249_p6 = scmp.lt.u32.totalorder %s245_s28, %s316_s3 }
 0x22e   :  { %p251_p7 = pnand %p249_p6, %p246_p5 }
 0x230   :  { %254 = shalt.err (!%p251_p7)
}
 0x231   :  { %s258_s6 = smov 128   ;;  %s259_s7 = smov 8  }
 0x232   :  { %176 = dma.vmem_to_hbm [thread:$0]  %s171_s1, 512, %s316_s3, [#allocation3], %s258_s6, %s258_s6, %s259_s7  }
 0x233   :  { %255 = dma.done.wait [#allocation3], 512  }
 0x234   :  { %256 = vsyncadd [#allocation3], 4294966784 }
 0x235   :  { %180 = vsyncpa [#allocation3], 1 }

</bundles_post_ra>
